<compile_context>
chip_gen: v5e
topology: v5e:2x2
jax: 0.10.0
libtpu: 0.0.40
codegen_flags: <defaults>
</compile_context>

<pallas_src>
import functools

import jax
import jax.numpy as jnp
from jax.experimental import pallas as pl
from jax.experimental.pallas import tpu as pltpu


# --------------------------------------------------------------------------- #
# Padded-VMEM helpers (feedback: account for (8/16/32, 128) tile padding)
# --------------------------------------------------------------------------- #
def _round_up(x, m):
    return ((x + m - 1) // m) * m


def _sublane_multiple(dtype):
    # f32 -> 8, bf16/f16 -> 16, int8/fp8 -> 32
    return max(8, 32 // jnp.dtype(dtype).itemsize)


def _padded_bytes(shape, dtype):
    """VMEM bytes of a block/scratch whose last two dims map to (sublane, lane)."""
    d = jnp.dtype(dtype)
    shape = tuple(int(s) for s in shape)
    if len(shape) == 0:
        return d.itemsize
    if len(shape) == 1:
        lead, sl, ln = 1, 1, shape[0]
    else:
        lead = 1
        for s in shape[:-2]:
            lead *= s
        sl, ln = shape[-2], shape[-1]
    return lead * _round_up(sl, _sublane_multiple(d)) * _round_up(ln, 128) * d.itemsize


def _tpu_params():
    """(vmem_capacity_bytes, tensorcores_per_chip) with conservative fallbacks."""
    vmem_cap = 64 * 1024 * 1024          # conservative: v7x per-TC VMEM
    n_cores = 1
    try:
        info = pltpu.get_tpu_info()
        cap = getattr(info, "vmem_capacity_bytes", None)
        if cap:
            vmem_cap = int(cap)
    except Exception:
        pass
    try:
        kind = jax.devices()[0].device_kind.lower()
        # chips with 2 TensorCores sharing the grid's "parallel" axes
        if any(tag in kind for tag in ("v7", "v5p", "v4")):
            n_cores = 2
    except Exception:
        pass
    return vmem_cap, n_cores


def _pick_tile_p(P, tile_b, C, D, dtype, stream_budget):
    """Largest patch tile whose (padded, double-buffered) block fits the budget."""
    sub = _sublane_multiple(dtype)
    is_f32 = jnp.dtype(dtype) == jnp.dtype(jnp.float32)

    def stream_bytes(tp):
        pb = _padded_bytes((tile_b, C, tp, D), dtype)
        # allowance for the f32 accumulation temp when the input is narrower
        extra = 0 if is_f32 else _padded_bytes((tile_b, C, tp, D), jnp.float32)
        return 2 * pb + extra                              # double-buffered input

    if stream_bytes(P) <= stream_budget:
        return P                                           # single patch step
    # largest dtype-aligned divisor of P that fits
    t = (P // sub) * sub
    while t >= sub:
        if P % t == 0 and stream_bytes(t) <= stream_budget:
            return t
        t -= sub
    # no aligned divisor fits: largest aligned tile that fits; the remainder is
    # handled with a cdiv grid + in-kernel masking (budget respected).
    t = (P // sub) * sub
    while t > sub and stream_bytes(t) > stream_budget:
        t -= sub
    return max(min(t, P), min(sub, P))


# --------------------------------------------------------------------------- #
# Kernel: pooling (running reduction over patch tiles) + flatten + linear
# --------------------------------------------------------------------------- #
def _head_kernel(emb_ref, w_ref, b_ref, out_ref, acc_ref, flat_ref, *,
                 mode, inv_p, tile_p, total_p, needs_mask, precision):
    p = pl.program_id(1)

    @pl.when(p == 0)
    def _init():
        if mode == "max":
            acc_ref[...] = jnp.full(acc_ref.shape, -jnp.inf, acc_ref.dtype)
        else:
            acc_ref[...] = jnp.zeros(acc_ref.shape, acc_ref.dtype)

    e = emb_ref[...]                                      # (tb, C, tp, D) native dtype

    if needs_mask:                                        # static: only for ragged P
        patch_idx = jax.lax.broadcasted_iota(
            jnp.int32, (e.shape[2], e.shape[3]), 0)       # (tp, D)
        valid = (p * tile_p + patch_idx) < total_p
        valid = valid[None, None, :, :]                   # broadcast over (tb, C)
        if mode == "max":
            e = jnp.where(valid, e, jnp.asarray(-jnp.inf, dtype=e.dtype))
        else:
            e = jnp.where(valid, e, jnp.asarray(0, dtype=e.dtype))

    if mode == "max":
        # reduce in the native dtype; upcast only the (tb, C, D) partial
        acc_ref[...] = jnp.maximum(acc_ref[...],
                                   jnp.max(e, axis=2).astype(jnp.float32))
    else:  # "mean" (also the cls-token path, where P == 1)
        # cast fused into the reduction: no standalone full-block f32 copy kept live
        acc_ref[...] = acc_ref[...] + jnp.sum(e, axis=2, dtype=jnp.float32)

    @pl.when(p == pl.num_programs(1) - 1)
    def _finalize():
        pooled = acc_ref[...]                             # (tb, C, D) f32
        if mode == "mean":
            pooled = pooled * inv_p                       # multiply, not divide
        n_ch, d_model = pooled.shape[1], pooled.shape[2]
        # Flatten(start_dim=1): pack channels into a lane-dense (tb, C*D) slab
        # (tiny static slice stores, finalize-only), then ONE MXU matmul.
        for c in range(n_ch):
            flat_ref[:, c * d_model:(c + 1) * d_model] = pooled[:, c, :]
        res = jnp.dot(flat_ref[...], w_ref[...],
                      preferred_element_type=jnp.float32,
                      precision=precision)                # (tb, T)
        out_ref[:, 0, :] = (res + b_ref[...].astype(jnp.float32)).astype(out_ref.dtype)


# --------------------------------------------------------------------------- #
# Wrapper
# --------------------------------------------------------------------------- #
def patchtst_classification_head(embedding, weight, bias, *,
                                 use_cls_token=False, pooling_type="mean",
                                 tile_b=None, tile_p=None, mxu_precision=None):
    """
    embedding : (B, C, P, D)  float  (P = num_patches, or num_patches+1 w/ cls)
    weight    : (T, C * D)           (torch nn.Linear layout)
    bias      : (T,)
    Returns   : (B, T)
    """
    B, C, P, D = embedding.shape
    T, CD = weight.shape
    assert CD == C * D, "weight must be (num_targets, num_channels * d_model)"

    if use_cls_token:
        # Only patch 0 is needed: a tiny XLA slice avoids streaming the rest.
        embedding = embedding[:, :, 0:1, :]
        P = 1
        mode = "mean"                                     # mean of one element
    elif pooling_type in ("mean", "max"):
        mode = pooling_type
    else:
        raise ValueError(f"pooling operator {pooling_type} is not implemented yet")

    # weight -> (C*D, T): channel-major / d_model-minor, matching Flatten(start_dim=1)
    w2 = jnp.transpose(weight)                            # (C*D, T)
    b2 = bias.reshape(1, T)

    if mxu_precision is None:
        # f32 inputs: match torch's full-f32 Linear accumulation.
        # (Tiny epilogue matmul; on v5e drop to DEFAULT via mxu_precision=... if desired.)
        mxu_precision = (jax.lax.Precision.HIGHEST
                         if (embedding.dtype == jnp.float32
                             and weight.dtype == jnp.float32)
                         else jax.lax.Precision.DEFAULT)

    # ---- generation-aware budgets -------------------------------------------------
    vmem_cap, n_cores = _tpu_params()
    headroom = 16 * 1024 * 1024
    usable = max(vmem_cap - headroom, 24 * 1024 * 1024)   # e.g. 48 MiB on v7x, 112 MiB on v5e/v6e
    stream_budget = int(0.75 * min(usable, 100 * 1024 * 1024))

    if tile_b is None:
        # Split the (parallel) batch axis only when a second TensorCore exists.
        tile_b = B // 2 if (n_cores >= 2 and B >= 2 and B % 2 == 0) else B
    assert B % tile_b == 0, "tile_b must divide the batch size"

    emb_dtype = embedding.dtype
    if tile_p is None:
        tile_p = _pick_tile_p(P, tile_b, C, D, emb_dtype, stream_budget)
    tile_p = max(1, min(int(tile_p), P))
    needs_mask = (P % tile_p) != 0
    grid = (B // tile_b, pl.cdiv(P, tile_p))

    # ---- padded VMEM accounting ----------------------------------------------------
    emb_pb = _padded_bytes((tile_b, C, tile_p, D), emb_dtype)
    f32_tmp = (0 if jnp.dtype(emb_dtype) == jnp.dtype(jnp.float32)
               else _padded_bytes((tile_b, C, tile_p, D), jnp.float32))
    w_pb = _padded_bytes((CD, T), w2.dtype)
    b_pb = _padded_bytes((1, T), b2.dtype)
    out_pb = _padded_bytes((tile_b, 1, T), emb_dtype)
    acc_pb = _padded_bytes((tile_b, C, D), jnp.float32)
    flat_pb = _padded_bytes((tile_b, CD), jnp.float32)
    needed = (2 * emb_pb + f32_tmp + 2 * w_pb + 2 * b_pb + 2 * out_pb
              + acc_pb + flat_pb + 2 * 1024 * 1024)       # + internal scratch slack
    vmem_limit = int(min(max(needed, 32 * 1024 * 1024),
                         max(vmem_cap - 8 * 1024 * 1024, 32 * 1024 * 1024)))
    vmem_limit = max(vmem_limit, int(needed))

    out3 = pl.pallas_call(
        functools.partial(_head_kernel, mode=mode, inv_p=1.0 / P, tile_p=tile_p,
                          total_p=P, needs_mask=needs_mask, precision=mxu_precision),
        out_shape=jax.ShapeDtypeStruct((B, 1, T), embedding.dtype),
        grid_spec=pltpu.PrefetchScalarGridSpec(
            num_scalar_prefetch=0,
            grid=grid,
            in_specs=[
                pl.BlockSpec((tile_b, C, tile_p, D), lambda b, p: (b, 0, p, 0)),
                pl.BlockSpec((CD, T), lambda b, p: (0, 0)),
                pl.BlockSpec((1, T), lambda b, p: (0, 0)),
            ],
            out_specs=pl.BlockSpec((tile_b, 1, T), lambda b, p: (b, 0, 0)),
            scratch_shapes=[pltpu.VMEM((tile_b, C, D), jnp.float32),   # running pool
                            pltpu.VMEM((tile_b, CD), jnp.float32)],    # flattened pool
        ),
        compiler_params=pltpu.CompilerParams(
            dimension_semantics=("parallel", "arbitrary"),
            vmem_limit_bytes=vmem_limit,
        ),
    )(embedding, w2, b2)
    return out3.reshape(B, T)


# --------------------------------------------------------------------------- #
# Pure-JAX reference (mirrors the PyTorch forward exactly, eval-mode dropout)
# --------------------------------------------------------------------------- #
def _reference(embedding, weight, bias, *, use_cls_token, pooling_type):
    emb = embedding.astype(jnp.float32)
    w = weight.astype(jnp.float32)
    b = bias.astype(jnp.float32)
    if use_cls_token:
        pooled = emb[:, :, 0, :]
    elif pooling_type == "mean":
        pooled = jnp.mean(emb, axis=2)
    elif pooling_type == "max":
        pooled = jnp.max(emb, axis=2)
    else:
        raise ValueError(pooling_type)
    flat = pooled.reshape(pooled.shape[0], -1)
    return jnp.dot(flat, w.T, precision=jax.lax.Precision.HIGHEST) + b


if __name__ == "__main__":
    # Small shapes consistent with the module:
    # batch=2, num_input_channels=4, num_patches=16, d_model=32, num_targets=3.
    B, C, P, D, T = 2, 4, 16, 32, 3
    key = jax.random.PRNGKey(0)
    k_emb, k_w, k_b, k_cls, k_rag = jax.random.split(key, 5)

    embedding = jax.random.normal(k_emb, (B, C, P, D), dtype=jnp.float32)
    weight = jax.random.normal(k_w, (T, C * D), dtype=jnp.float32) * 0.1
    bias = jax.random.normal(k_b, (T,), dtype=jnp.float32)

    def check(out, ref, tol):
        out = jax.block_until_ready(out)
        assert out.shape == ref.shape
        err = jnp.max(jnp.abs(out.astype(jnp.float32) - ref))
        assert jnp.allclose(out.astype(jnp.float32), ref, atol=tol, rtol=tol), float(err)

    # 1) mean pooling, default (auto) tiling
    ref_mean = _reference(embedding, weight, bias,
                          use_cls_token=False, pooling_type="mean")
    check(patchtst_classification_head(embedding, weight, bias,
                                       pooling_type="mean"), ref_mean, 2e-3)

    # 2) mean pooling with a tiled patch axis (exercises the running accumulator)
    check(patchtst_classification_head(embedding, weight, bias,
                                       pooling_type="mean", tile_p=8), ref_mean, 2e-3)

    # 3) max pooling
    ref_max = _reference(embedding, weight, bias,
                         use_cls_token=False, pooling_type="max")
    check(patchtst_classification_head(embedding, weight, bias,
                                       pooling_type="max"), ref_max, 2e-3)

    # 4) cls-token path (embedding carries num_patches + 1)
    emb_cls = jax.random.normal(k_cls, (B, C, P + 1, D), dtype=jnp.float32)
    ref_cls = _reference(emb_cls, weight, bias,
                         use_cls_token=True, pooling_type="mean")
    check(patchtst_classification_head(emb_cls, weight, bias,
                                       use_cls_token=True), ref_cls, 2e-3)

    # 5) non-divisible patch count -> cdiv grid + masked remainder tile
    emb_rag = jax.random.normal(k_rag, (B, C, 20, D), dtype=jnp.float32)
    ref_rm = _reference(emb_rag, weight, bias,
                        use_cls_token=False, pooling_type="mean")
    check(patchtst_classification_head(emb_rag, weight, bias,
                                       pooling_type="mean", tile_p=8), ref_rm, 2e-3)
    ref_rx = _reference(emb_rag, weight, bias,
                        use_cls_token=False, pooling_type="max")
    check(patchtst_classification_head(emb_rag, weight, bias,
                                       pooling_type="max", tile_p=8), ref_rx, 2e-3)

    # 6) bf16 embedding (fused-cast reduction, f32 accumulator, bf16 output)
    emb_bf = embedding.astype(jnp.bfloat16)
    ref_bf = _reference(emb_bf, weight, bias,
                        use_cls_token=False, pooling_type="mean")
    check(patchtst_classification_head(emb_bf, weight, bias,
                                       pooling_type="mean"), ref_bf, 3e-2)

    print("KERNEL_OK")
</pallas_src>

<mosaic_0001>
module attributes {stable_mosaic.version = 11 : i64} {
  func.func @_head_kernel(%arg0: i32, %arg1: i32, %arg2: memref<2x4x16x32xf32, #tpu.memory_space<vmem>>, %arg3: memref<128x3xf32, #tpu.memory_space<vmem>>, %arg4: memref<1x3xf32, #tpu.memory_space<vmem>>, %arg5: memref<2x1x3xf32, #tpu.memory_space<vmem>>, %arg6: memref<2x4x32xf32, #tpu.memory_space<vmem>>, %arg7: memref<2x128xf32, #tpu.memory_space<vmem>>) attributes {dimension_semantics = [#tpu.dimension_semantics<parallel>, #tpu.dimension_semantics<arbitrary>], iteration_bounds = array<i64: 1, 1>, scalar_prefetch = 0 : i64, scratch_operands = 2 : i64, tpu.core_type = #tpu.core_type<tc>, window_params = [{transform_indices = @transform_0, window_bounds = array<i64: 2, 4, 16, 32>}, {pipeline_mode = #tpu.pipeline_mode<synchronous>, transform_indices = @transform_1, window_bounds = array<i64: 128, 3>}, {pipeline_mode = #tpu.pipeline_mode<synchronous>, transform_indices = @transform_2, window_bounds = array<i64: 1, 3>}, {transform_indices = @transform_3, window_bounds = array<i64: 2, 1, 3>}]} {
    %c0_i32 = arith.constant 0 : i32
    %0 = arith.cmpi eq, %arg1, %c0_i32 : i32
    %1 = arith.extui %0 : i1 to i32
    %c0_i32_0 = arith.constant 0 : i32
    %2 = arith.cmpi ne, %1, %c0_i32_0 : i32
    scf.if %2 {
      %cst_12 = arith.constant 0.000000e+00 : f32
      %11 = vector.broadcast %cst_12 : f32 to vector<2x4x32xf32>
      %c0_13 = arith.constant 0 : index
      %c0_14 = arith.constant 0 : index
      %c0_15 = arith.constant 0 : index
      %12 = vector.load %arg6[%c0_13, %c0_14, %c0_15] : memref<2x4x32xf32, #tpu.memory_space<vmem>>, vector<2x4x32xf32>
      tpu.vector_store %arg6[%c0_13, %c0_14, %c0_15], %11 {strides = array<i32>} : memref<2x4x32xf32, #tpu.memory_space<vmem>>, vector<2x4x32xf32>,
    } else {
    }
    %c0 = arith.constant 0 : index
    %c0_1 = arith.constant 0 : index
    %c0_2 = arith.constant 0 : index
    %c0_3 = arith.constant 0 : index
    %3 = vector.load %arg2[%c0, %c0_1, %c0_2, %c0_3] : memref<2x4x16x32xf32, #tpu.memory_space<vmem>>, vector<2x4x16x32xf32>
    %c0_4 = arith.constant 0 : index
    %c0_5 = arith.constant 0 : index
    %c0_6 = arith.constant 0 : index
    %4 = vector.load %arg6[%c0_4, %c0_5, %c0_6] : memref<2x4x32xf32, #tpu.memory_space<vmem>>, vector<2x4x32xf32>
    %cst = arith.constant dense<0.000000e+00> : vector<2x4x32xf32>
    %5 = vector.multi_reduction <add>, %3, %cst [2] : vector<2x4x16x32xf32> to vector<2x4x32xf32>
    %6 = arith.addf %4, %5 : vector<2x4x32xf32>
    %c0_7 = arith.constant 0 : index
    %c0_8 = arith.constant 0 : index
    %c0_9 = arith.constant 0 : index
    %7 = vector.load %arg6[%c0_7, %c0_8, %c0_9] : memref<2x4x32xf32, #tpu.memory_space<vmem>>, vector<2x4x32xf32>
    tpu.vector_store %arg6[%c0_7, %c0_8, %c0_9], %6 {strides = array<i32>} : memref<2x4x32xf32, #tpu.memory_space<vmem>>, vector<2x4x32xf32>,
    %c0_i32_10 = arith.constant 0 : i32
    %8 = arith.cmpi eq, %arg1, %c0_i32_10 : i32
    %9 = arith.extui %8 : i1 to i32
    %c0_i32_11 = arith.constant 0 : i32
    %10 = arith.cmpi ne, %9, %c0_i32_11 : i32
    scf.if %10 {
      %c0_12 = arith.constant 0 : index
      %c0_13 = arith.constant 0 : index
      %c0_14 = arith.constant 0 : index
      %11 = vector.load %arg6[%c0_12, %c0_13, %c0_14] : memref<2x4x32xf32, #tpu.memory_space<vmem>>, vector<2x4x32xf32>
      %cst_15 = arith.constant 6.250000e-02 : f32
      %12 = vector.broadcast %cst_15 : f32 to vector<2x4x32xf32>
      %13 = arith.mulf %11, %12 : vector<2x4x32xf32>
      %14 = vector.extract_strided_slice %13 {offsets = [0, 0, 0], sizes = [2, 1, 32], strides = [1, 1, 1]} : vector<2x4x32xf32> to vector<2x1x32xf32>
      %15 = vector.shape_cast %14 : vector<2x1x32xf32> to vector<2x32xf32>
      %c0_16 = arith.constant 0 : index
      %c0_17 = arith.constant 0 : index
      %16 = vector.load %arg7[%c0_16, %c0_17] : memref<2x128xf32, #tpu.memory_space<vmem>>, vector<2x32xf32>
      tpu.vector_store %arg7[%c0_16, %c0_17], %15 {strides = array<i32>} : memref<2x128xf32, #tpu.memory_space<vmem>>, vector<2x32xf32>,
      %17 = vector.extract_strided_slice %13 {offsets = [0, 1, 0], sizes = [2, 1, 32], strides = [1, 1, 1]} : vector<2x4x32xf32> to vector<2x1x32xf32>
      %18 = vector.shape_cast %17 : vector<2x1x32xf32> to vector<2x32xf32>
      %c0_18 = arith.constant 0 : index
      %c32 = arith.constant 32 : index
      %19 = vector.load %arg7[%c0_18, %c32] : memref<2x128xf32, #tpu.memory_space<vmem>>, vector<2x32xf32>
      tpu.vector_store %arg7[%c0_18, %c32], %18 {strides = array<i32>} : memref<2x128xf32, #tpu.memory_space<vmem>>, vector<2x32xf32>,
      %20 = vector.extract_strided_slice %13 {offsets = [0, 2, 0], sizes = [2, 1, 32], strides = [1, 1, 1]} : vector<2x4x32xf32> to vector<2x1x32xf32>
      %21 = vector.shape_cast %20 : vector<2x1x32xf32> to vector<2x32xf32>
      %c0_19 = arith.constant 0 : index
      %c64 = arith.constant 64 : index
      %22 = vector.load %arg7[%c0_19, %c64] : memref<2x128xf32, #tpu.memory_space<vmem>>, vector<2x32xf32>
      tpu.vector_store %arg7[%c0_19, %c64], %21 {strides = array<i32>} : memref<2x128xf32, #tpu.memory_space<vmem>>, vector<2x32xf32>,
      %23 = vector.extract_strided_slice %13 {offsets = [0, 3, 0], sizes = [2, 1, 32], strides = [1, 1, 1]} : vector<2x4x32xf32> to vector<2x1x32xf32>
      %24 = vector.shape_cast %23 : vector<2x1x32xf32> to vector<2x32xf32>
      %c0_20 = arith.constant 0 : index
      %c96 = arith.constant 96 : index
      %25 = vector.load %arg7[%c0_20, %c96] : memref<2x128xf32, #tpu.memory_space<vmem>>, vector<2x32xf32>
      tpu.vector_store %arg7[%c0_20, %c96], %24 {strides = array<i32>} : memref<2x128xf32, #tpu.memory_space<vmem>>, vector<2x32xf32>,
      %c0_21 = arith.constant 0 : index
      %c0_22 = arith.constant 0 : index
      %26 = vector.load %arg7[%c0_21, %c0_22] : memref<2x128xf32, #tpu.memory_space<vmem>>, vector<2x128xf32>
      %c0_23 = arith.constant 0 : index
      %c0_24 = arith.constant 0 : index
      %27 = vector.load %arg3[%c0_23, %c0_24] : memref<128x3xf32, #tpu.memory_space<vmem>>, vector<128x3xf32>
      %cst_25 = arith.constant dense<0.000000e+00> : vector<2x3xf32>
      %28 = tpu.matmul %26, %27, %cst_25 {dimension_numbers = #tpu.dot_dimension_numbers<[1], [0], [0], [1], [0, 0, 1, 1], [], []>, precision = #tpu.contract_precision<fp32>} : vector<2x128xf32>, vector<128x3xf32>, vector<2x3xf32> -> vector<2x3xf32>
      %c0_26 = arith.constant 0 : index
      %c0_27 = arith.constant 0 : index
      %29 = vector.load %arg4[%c0_26, %c0_27] : memref<1x3xf32, #tpu.memory_space<vmem>>, vector<1x3xf32>
      %30 = vector.broadcast %29 : vector<1x3xf32> to vector<2x3xf32>
      %31 = arith.addf %28, %30 : vector<2x3xf32>
      %c0_28 = arith.constant 0 : index
      %c0_29 = arith.constant 0 : index
      %c0_30 = arith.constant 0 : index
      %32 = vector.load %arg5[%c0_28, %c0_29, %c0_30] : memref<2x1x3xf32, #tpu.memory_space<vmem>>, vector<2x1x3xf32>
      %33 = vector.shape_cast %32 : vector<2x1x3xf32> to vector<2x3xf32>
      %34 = vector.shape_cast %31 : vector<2x3xf32> to vector<2x1x3xf32>
      tpu.vector_store %arg5[%c0_28, %c0_29, %c0_30], %34 {strides = array<i32>} : memref<2x1x3xf32, #tpu.memory_space<vmem>>, vector<2x1x3xf32>,
    } else {
    }
    return
  }
  func.func @transform_0(%arg0: i32, %arg1: i32) -> (i32, i32, i32, i32) {
    %c0_i32 = arith.constant 0 : i32
    %c0_i32_0 = arith.constant 0 : i32
    %c0_i32_1 = arith.constant 0 : i32
    return %arg0, %c0_i32, %arg1, %c0_i32_0 : i32, i32, i32, i32
  }
  func.func @transform_1(%arg0: i32, %arg1: i32) -> (i32, i32) {
    %c0_i32 = arith.constant 0 : i32
    %c0_i32_0 = arith.constant 0 : i32
    %c0_i32_1 = arith.constant 0 : i32
    return %c0_i32, %c0_i32_0 : i32, i32
  }
  func.func @transform_2(%arg0: i32, %arg1: i32) -> (i32, i32) {
    %c0_i32 = arith.constant 0 : i32
    %c0_i32_0 = arith.constant 0 : i32
    %c0_i32_1 = arith.constant 0 : i32
    return %c0_i32, %c0_i32_0 : i32, i32
  }
  func.func @transform_3(%arg0: i32, %arg1: i32) -> (i32, i32, i32) {
    %c0_i32 = arith.constant 0 : i32
    %c0_i32_0 = arith.constant 0 : i32
    %c0_i32_1 = arith.constant 0 : i32
    return %arg0, %c0_i32, %c0_i32_0 : i32, i32, i32
  }
}

</mosaic_0001>

<bundles_post_ra>
// kernel: tpu_custom_call.1
= control target key start
LH: loop header
LB: loop body
LE: loop exit
PB: predicated region body
PF: predicated region fallthrough
CT: control target
= control target key end

     0   :  { %vm19_vm0 = vcmask 257024   ;;  %vm40_vm1 = vcmask 261120   ;;  %v590_v3 = vmov 0.0   ;;  %s992_s0 = inlined_call_operand.vmem [shape: f32[2,4,16,32], index: 0, kind: input, shape index: {}]   ;;  %s993_s1 = inlined_call_operand.vmem [shape: f32[128,3], index: 1, kind: input, shape index: {}]   ;;  %s994_s2 = inlined_call_operand.vmem [shape: f32[1,3], index: 2, kind: input, shape index: {}]   ;;  %s995_s3 = inlined_call_operand.hbm [shape: f32[2,1,3], index: 3, kind: output, shape index: {}]  }
   0x1   :  { %v22_v0 = vld [vmem:[%s992_s0] sm:$0xff]  ;;  %v23_v1 = vld [vmem:[%s992_s0 + $0x8] sm:$0xff]  ;;  %v24_v2 = vld [vmem:[%s992_s0 + $0x10] sm:$0xff]  ;;  %20 = vst.msk [vmem:[#allocation2] sm:$0xf] %vm19_vm0, %v590_v3 }
   0x2   :  { %v25_v4 = vld [vmem:[%s992_s0 + $0x18] sm:$0xff]  ;;  %v26_v5 = vld [vmem:[%s992_s0 + $0x20] sm:$0xff]  ;;  %v27_v6 = vld [vmem:[%s992_s0 + $0x28] sm:$0xff]  ;;  %v41_v7 = vsel %vm40_vm1, %v22_v0, 0.0  ;;  %21 = vst.msk [vmem:[#allocation2 + $0x4] sm:$0xf] %vm19_vm0, %v590_v3 }
   0x3   :  { %v28_v8 = vld [vmem:[%s992_s0 + $0x30] sm:$0xff]  ;;  %v29_v9 = vld [vmem:[%s992_s0 + $0x38] sm:$0xff]  ;;  %v30_v10 = vld [vmem:[%s992_s0 + $0x40] sm:$0xff]  ;;  %v42_v11 = vsel %vm40_vm1, %v23_v1, 0.0  ;;  %v50_v16 = vsel %vm40_vm1, %v24_v2, 0.0  ;;  %v51_v17 = vsel %vm40_vm1, %v25_v4, 0.0 }
   0x4   :  { %v31_v12 = vld [vmem:[%s992_s0 + $0x48] sm:$0xff]  ;;  %v32_v13 = vld [vmem:[%s992_s0 + $0x50] sm:$0xff]  ;;  %v33_v14 = vld [vmem:[%s992_s0 + $0x58] sm:$0xff]  ;;  %v43_v15 = vadd.f32 %v42_v11, %v41_v7  ;;  %v59_v18 = vsel %vm40_vm1, %v26_v5, 0.0  ;;  %v52_v19 = vadd.f32 %v51_v17, %v50_v16  ;;  %v60_v20 = vsel %vm40_vm1, %v27_v6, 0.0 }
   0x5   :  { %v68_v21 = vsel %vm40_vm1, %v28_v8, 0.0  ;;  %v69_v22 = vsel %vm40_vm1, %v29_v9, 0.0  ;;  %v34_v23 = vld [vmem:[%s992_s0 + $0x60] sm:$0xff]  ;;  %v35_v24 = vld [vmem:[%s992_s0 + $0x68] sm:$0xff]  ;;  %v61_v26 = vadd.f32 %v60_v20, %v59_v18  ;;  %v77_v28 = vsel %vm40_vm1, %v30_v10, 0.0  ;;  %v36_v29 = vld [vmem:[%s992_s0 + $0x70] sm:$0xff] }
   0x6   :  { %v44_v25 = vrot.slane %v43_v15, 4  ;;  %v70_v27 = vadd.f32 %v69_v22, %v68_v21  ;;  %v53_v30 = vrot.slane %v52_v19, 4  ;;  %v78_v31 = vsel %vm40_vm1, %v31_v12, 0.0 }
   0x7   :  { %v86_v32 = vsel %vm40_vm1, %v32_v13, 0.0  ;;  %v87_v33 = vsel %vm40_vm1, %v33_v14, 0.0  ;;  %v62_v35 = vrot.slane %v61_v26, 4  ;;  %v79_v37 = vadd.f32 %v78_v31, %v77_v28 }
   0x8   :  { %v45_v34 = vadd.f32 %v44_v25, %v43_v15  ;;  %v71_v36 = vrot.slane %v70_v27, 4 }
   0x9   :  { %8 = vsyncpa [#allocation5], 0  ;;  %v54_v38 = vadd.f32 %v53_v30, %v52_v19  ;;  %v88_v39 = vadd.f32 %v87_v33, %v86_v32  ;;  %v95_v40 = vsel %vm40_vm1, %v34_v23, 0.0  ;;  %v96_v41 = vsel %vm40_vm1, %v35_v24, 0.0  ;;  %v37_v42 = vld [vmem:[%s992_s0 + $0x78] sm:$0xff]  ;;  %v185_v25 = vld [vmem:[%s993_s1 + $0x70] sm:$0xff] }
   0xa   :  { %v46_v43 = vrot.slane %v45_v34, 2  ;;  %v63_v44 = vadd.f32 %v62_v35, %v61_v26  ;;  %v72_v45 = vadd.f32 %v71_v36, %v70_v27  ;;  %v80_v46 = vrot.slane %v79_v37, 4  ;;  %v38_v18 = vld [vmem:[#allocation2] sm:$0xf]  ;;  %v186_v24 = vld [vmem:[%s993_s1 + $0x78] sm:$0xff]  ;;  %v184_v26 = vld [vmem:[%s993_s1 + $0x68] sm:$0xff] }
   0xb   :  { %v55_v47 = vrot.slane %v54_v38, 2  ;;  %v89_v48 = vrot.slane %v88_v39, 4  ;;  %v97_v49 = vadd.f32 %v96_v41, %v95_v40  ;;  %v104_v50 = vsel %vm40_vm1, %v36_v29, 0.0  ;;  %v183_v31 = vld [vmem:[%s993_s1 + $0x60] sm:$0xff]  ;;  %v182_v32 = vld [vmem:[%s993_s1 + $0x58] sm:$0xff]  ;;  %v181_v33 = vld [vmem:[%s993_s1 + $0x50] sm:$0xff] }
   0xc   :  { %v47_v51 = vadd.f32 %v46_v43, %v45_v34  ;;  %v64_v52 = vrot.slane %v63_v44, 2  ;;  %v73_v53 = vrot.slane %v72_v45, 2  ;;  %v81_v54 = vadd.f32 %v80_v46, %v79_v37  ;;  %s592_s20 = smov 96   ;;  %s593_s21 = smov 64  }
   0xd   :  { %v56_v55 = vadd.f32 %v55_v47, %v54_v38  ;;  %v90_v56 = vadd.f32 %v89_v48, %v88_v39  ;;  %v98_v57 = vrot.slane %v97_v49, 4  ;;  %v105_v58 = vsel %vm40_vm1, %v37_v42, 0.0  ;;  %v180_v42 = vld [vmem:[%s993_s1 + $0x48] sm:$0xff]  ;;  %s594_s24 = smov [#allocation4]   ;;  %s544_s28 = sshll.u32 %s995_s3, 4  ;;  %s545_s28 = int_to_ptr.hbm [resolvable:$true] %s544_s28 }
   0xe   :  { %v48_v59 = vrot.slane %v47_v51, 1  ;;  %v65_v60 = vadd.f32 %v64_v52, %v63_v44  ;;  %v74_v61 = vadd.f32 %v73_v53, %v72_v45  ;;  %v82_v62 = vrot.slane %v81_v54, 2  ;;  %s542_s25 = sshll.u32 %s594_s24, 4  ;;  %s596_s29 = smov 1   ;;  %s543_s25 = int_to_ptr.vmem [resolvable:$true] %s542_s25 }
   0xf   :  { %v57_v63 = vrot.slane %v56_v55, 1  ;;  %v91_v0 = vrot.slane %v90_v56, 2  ;;  %v99_v1 = vadd.f32 %v98_v57, %v97_v49  ;;  %v106_v2 = vadd.f32 %v105_v58, %v104_v50 }
  0x10   :  { %v49_v3 = vadd.f32 %v48_v59, %v47_v51  ;;  %v66_v4 = vrot.slane %v65_v60, 1  ;;  %v75_v5 = vrot.slane %v74_v61, 1  ;;  %v83_v6 = vadd.f32 %v82_v62, %v81_v54  ;;  %v39_v51 = vld [vmem:[#allocation2 + $0x4] sm:$0xf] }
  0x11   :  { %v58_v7 = vadd.f32 %v57_v63, %v56_v55  ;;  %v92_v8 = vadd.f32 %v91_v0, %v90_v56  ;;  %v100_v9 = vrot.slane %v99_v1, 2  ;;  %v107_v10 = vrot.slane %v106_v2, 4  ;;  %v179_v0 = vld [vmem:[%s993_s1 + $0x40] sm:$0xff] }
  0x12   :  { %v67_v11 = vadd.f32 %v66_v4, %v65_v60  ;;  %v76_v12 = vadd.f32 %v75_v5, %v74_v61  ;;  %v84_v13 = vrot.slane %v83_v6, 1  ;;  %vm121_vm2 = vcmask 1041409   ;;  %v177_v5 = vld [vmem:[%s993_s1 + $0x30] sm:$0xff] }
  0x13   :  { %v93_v14 = vrot.slane %v92_v8, 1  ;;  %v101_v15 = vadd.f32 %v100_v9, %v99_v1  ;;  %v108_v16 = vadd.f32 %v107_v10, %v106_v2  ;;  %v122_v17 = vsel %vm121_vm2, %v58_v7, %v49_v3  ;;  %v178_v1 = vld [vmem:[%s993_s1 + $0x38] sm:$0xff]  ;;  %v175_v9 = vld [vmem:[%s993_s1 + $0x20] sm:$0xff] }
  0x14   :  { %v85_v19 = vadd.f32 %v84_v13, %v83_v6  ;;  %vm123_vm3 = vcmask 1042434   ;;  %vm125_vm4 = vcmask 1043459   ;;  %v695_v28 = vand.u32 4294901760, %v186_v24  ;;  %v174_v10 = vld [vmem:[%s993_s1 + $0x18] sm:$0xff] }
  0x15   :  { %v94_v20 = vadd.f32 %v93_v14, %v92_v8  ;;  %v102_v21 = vrot.slane %v101_v15, 1  ;;  %v109_v22 = vrot.slane %v108_v16, 2  ;;  %v124_v23 = vsel %vm123_vm3, %v67_v11, %v122_v17  ;;  %v176_v8 = vld [vmem:[%s993_s1 + $0x28] sm:$0xff] }
  0x16   :  { %v126_v27 = vsel %vm125_vm4, %v76_v12, %v124_v23  ;;  %v697_v29 = vand.u32 4294901760, %v185_v25  ;;  %v699_v30 = vand.u32 4294901760, %v184_v26  ;;  %v712_v38 = vsub.f32 %v186_v24, %v695_v28  ;;  %192 = vmatpush.msra.mxu0 %v695_v28  ;;  %388 = vmatpush.msra.mxu3 %v695_v28 }
  0x17   :  { %v103_v34 = vadd.f32 %v102_v21, %v101_v15  ;;  %v110_v35 = vadd.f32 %v109_v22, %v108_v16  ;;  %v127_v36 = vsel %vm121_vm2, %v94_v20, %v85_v19  ;;  %v132_v37 = vadd.f32 %v126_v27, %v38_v18  ;;  %v173_v20 = vld [vmem:[%s993_s1 + $0x10] sm:$0xff] }
  0x18   :  { %v715_v39 = vsub.f32 %v185_v25, %v697_v29  ;;  %v718_v40 = vsub.f32 %v184_v26, %v699_v30  ;;  %v720_v41 = vand.u32 4294901760, %v183_v31  ;;  %v729_v45 = vand.u32 4294901760, %v182_v32  ;;  %194 = vmatpush.msra.mxu0 %v697_v29  ;;  %335 = vmatpush.msra.mxu2 %v712_v38 }
  0x19   :  { %v111_v43 = vrot.slane %v110_v35, 1  ;;  %v128_v44 = vsel %vm123_vm3, %v103_v34, %v127_v36  ;;  %135 = vst.msk [vmem:[#allocation2] sm:$0xf] %vm19_vm0, %v132_v37  ;;  %v731_v46 = vand.u32 4294901760, %v181_v33  ;;  %v234_v47 = vand.u32 4294901760, %v712_v38  ;;  %390 = vmatpush.msra.mxu3 %v697_v29  ;;  %v172_v36 = vld [vmem:[%s993_s1 + $0x8] sm:$0xff] }
  0x1a   :  { %v240_v48 = vand.u32 4294901760, %v715_v39  ;;  %v246_v49 = vand.u32 4294901760, %v718_v40  ;;  %v737_v50 = vsub.f32 %v183_v31, %v720_v41  ;;  %v742_v53 = vsub.f32 %v182_v32, %v729_v45  ;;  %196 = vmatpush.msra.mxu0 %v699_v30  ;;  %338 = vmatpush.msra.mxu2 %v715_v39 }
  0x1b   :  { %v112_v52 = vadd.f32 %v111_v43, %v110_v35  ;;  %v745_v54 = vsub.f32 %v181_v33, %v731_v46  ;;  %v747_v55 = vand.u32 4294901760, %v180_v42  ;;  %v235_v56 = vsub.f32 %v712_v38, %v234_v47  ;;  %392 = vmatpush.msra.mxu3 %v699_v30 }
  0x1c   :  { %v241_v57 = vsub.f32 %v715_v39, %v240_v48  ;;  %v247_v58 = vsub.f32 %v718_v40, %v246_v49  ;;  %v252_v59 = vand.u32 4294901760, %v737_v50  ;;  %v258_v61 = vand.u32 4294901760, %v742_v53  ;;  %198 = vmatpush.msra.mxu0 %v720_v41  ;;  %341 = vmatpush.msra.mxu2 %v718_v40 }
  0x1d   :  { %v129_v60 = vsel %vm125_vm4, %v112_v52, %v128_v44  ;;  %v264_v62 = vand.u32 4294901760, %v745_v54  ;;  %v766_v63 = vsub.f32 %v180_v42, %v747_v55  ;;  %v236_v3 = vand.u32 4294901760, %v235_v56  ;;  %394 = vmatpush.msra.mxu3 %v720_v41 }
  0x1e   :  { %v133_v2 = vadd.f32 %v129_v60, %v39_v51  ;;  %v242_v4 = vand.u32 4294901760, %v241_v57  ;;  %v253_v6 = vsub.f32 %v737_v50, %v252_v59  ;;  %v259_v7 = vsub.f32 %v742_v53, %v258_v61  ;;  %200 = vmatpush.msra.mxu0 %v729_v45  ;;  %344 = vmatpush.msra.mxu2 %v737_v50  ;;  %v171_v57 = vld [vmem:[%s993_s1] sm:$0xff]  ;;  %s591_s1 = smov 32  }
  0x1f   :  { %237 = vmatpush.msra.mxu1 %v236_v3  ;;  %v248_v11 = vand.u32 4294901760, %v247_v58  ;;  %v270_v12 = vand.u32 4294901760, %v766_v63  ;;  %v798_v13 = vand.u32 4294901760, %v179_v0  ;;  %v801_v14 = vand.u32 4294901760, %v178_v1  ;;  %396 = vmatpush.msra.mxu3 %v729_v45 }
  0x20   :  { %136 = vst.msk [vmem:[#allocation2 + $0x4] sm:$0xf] %vm19_vm0, %v133_v2  ;;  %v265_v15 = vsub.f32 %v745_v54, %v264_v62  ;;  %v254_v16 = vand.u32 4294901760, %v253_v6  ;;  %202 = vmatpush.msra.mxu0 %v731_v46  ;;  %v815_v19 = vand.u32 4294901760, %v177_v5  ;;  %v260_v21 = vand.u32 4294901760, %v259_v7  ;;  %347 = vmatpush.msra.mxu2 %v742_v53 }
  0x21   :  { %243 = vmatpush.msra.mxu1 %v242_v4  ;;  %v809_v17 = vsub.f32 %v179_v0, %v798_v13  ;;  %v812_v18 = vsub.f32 %v178_v1, %v801_v14  ;;  %v820_v22 = vand.u32 4294901760, %v176_v8  ;;  %v822_v23 = vand.u32 4294901760, %v175_v9  ;;  %398 = vmatpush.msra.mxu3 %v731_v46  ;;  %v140_v25 = vld [vmem:[#allocation2] sm:$0xf] }
  0x22   :  { %v824_v24 = vand.u32 4294901760, %v174_v10  ;;  %v271_v26 = vsub.f32 %v766_v63, %v270_v12  ;;  %v834_v32 = vsub.f32 %v177_v5, %v815_v19  ;;  %204 = vmatpush.msra.mxu0 %v747_v55  ;;  %v843_v35 = vand.u32 4294901760, %v173_v20  ;;  %350 = vmatpush.msra.mxu2 %v745_v54 }
  0x23   :  { %249 = vmatpush.msra.mxu1 %v248_v11  ;;  %v276_v27 = vand.u32 4294901760, %v809_v17  ;;  %v282_v31 = vand.u32 4294901760, %v812_v18  ;;  %v838_v33 = vsub.f32 %v176_v8, %v820_v22  ;;  %v841_v34 = vsub.f32 %v175_v9, %v822_v23  ;;  %400 = vmatpush.msra.mxu3 %v747_v55 }
  0x24   :  { %v266_v37 = vand.u32 4294901760, %v265_v15  ;;  %v288_v43 = vand.u32 4294901760, %v834_v32  ;;  %206 = vmatpush.msra.mxu0 %v798_v13  ;;  %v854_v51 = vmul.f32 0.0625, %v140_v25  ;;  %v858_v56 = vsub.f32 %v174_v10, %v824_v24  ;;  %353 = vmatpush.msra.mxu2 %v766_v63 }
  0x25   :  { %255 = vmatpush.msra.mxu1 %v254_v16  ;;  %v277_v42 = vsub.f32 %v809_v17, %v276_v27  ;;  %v294_v52 = vand.u32 4294901760, %v838_v33  ;;  %v272_v60 = vand.u32 4294901760, %v271_v26  ;;  %v283_v0 = vsub.f32 %v812_v18, %v282_v31  ;;  %402 = vmatpush.msra.mxu3 %v798_v13 }
  0x26   :  { %208 = vmatpush.msra.mxu0 %v801_v14  ;;  %v869_v1 = vand.u32 4294901760, %v172_v36  ;;  %vm163_vm5 = vcmask 1044484   ;;  %v300_v2 = vand.u32 4294901760, %v841_v34  ;;  %v873_v3 = vsub.f32 %v173_v20, %v843_v35  ;;  %356 = vmatpush.msra.mxu2 %v809_v17 }
  0x27   :  { %v141_v44 = vld [vmem:[#allocation2 + $0x4] sm:$0xf]  ;;  %261 = vmatpush.msra.mxu1 %v260_v21  ;;  %v278_v5 = vand.u32 4294901760, %v277_v42  ;;  %v289_v6 = vsub.f32 %v834_v32, %v288_v43  ;;  %v882_v7 = vand.u32 4294901760, %v171_v57  ;;  %v295_v8 = vsub.f32 %v838_v33, %v294_v52  ;;  %404 = vmatpush.msra.mxu3 %v801_v14 }
  0x28   :  { %v143_v58 = vmul.f32 0.0625, %v141_v44  ;;  %210 = vmatpush.msra.mxu0 %v815_v19  ;;  %v306_v9 = vand.u32 4294901760, %v858_v56  ;;  %359 = vmatpush.msra.mxu2 %v812_v18  ;;  %v284_v15 = vand.u32 4294901760, %v283_v0  ;;  %v897_v16 = vsub.f32 %v172_v36, %v869_v1 }
  0x29   :  { %267 = vmatpush.msra.mxu1 %v266_v37  ;;  %v290_v20 = vand.u32 4294901760, %v289_v6  ;;  %v301_v21 = vsub.f32 %v841_v34, %v300_v2  ;;  %v312_v25 = vand.u32 4294901760, %v873_v3  ;;  %v905_v26 = vsub.f32 %v171_v57, %v882_v7  ;;  %406 = vmatpush.msra.mxu3 %v815_v19 }
  0x2a   :  { %v876_v4 = vrot.slane %v143_v58, 7  ;;  %212 = vmatpush.msra.mxu0 %v820_v22  ;;  %362 = vmatpush.msra.mxu2 %v834_v32  ;;  %v296_v36 = vand.u32 4294901760, %v295_v8  ;;  %v307_v37 = vsub.f32 %v858_v56, %v306_v9  ;;  %v318_v42 = vand.u32 4294901760, %v897_v16 }
  0x2b   :  { %273 = vmatpush.msra.mxu1 %v272_v60  ;;  %v302_v57 = vand.u32 4294901760, %v301_v21  ;;  %v313_v58 = vsub.f32 %v873_v3, %v312_v25  ;;  %v324_v60 = vand.u32 4294901760, %v905_v26  ;;  %408 = vmatpush.msra.mxu3 %v820_v22  ;;  %vm149_vm6 = vcmask 254976  }
  0x2c   :  { %v151_v10 = vsel %vm123_vm3, %v876_v4, %v854_v51  ;;  %v164_v11 = vsel %vm163_vm5, %v876_v4, %v854_v51  ;;  %214 = vmatpush.msra.mxu0 %v822_v23  ;;  %365 = vmatpush.msra.mxu2 %v838_v33  ;;  %v157_v44 = vsel %vm125_vm4, %v876_v4, %v854_v51  ;;  %v308_v0 = vand.u32 4294901760, %v307_v37 }
  0x2d   :  { %152 = vrot.lane.b32.xlu0 %v151_v10, %s591_s1  ;;  %165 = vrot.lane.b32.xlu1 %v164_v11, %s592_s20  ;;  %v314_v6 = vand.u32 4294901760, %v313_v58  ;;  %v325_v8 = vsub.f32 %v905_v26, %v324_v60  ;;  %vm155_vm7 = vcmask 518401   ;;  %vm161_vm8 = vcmask 781826  }
  0x2e   :  { %279 = vmatpush.msra.mxu1 %v278_v5  ;;  %216 = vmatpush.msra.mxu0 %v824_v24  ;;  %v319_v5 = vsub.f32 %v897_v16, %v318_v42  ;;  %vm168_vm9 = vcmask 1045251   ;;  %vm535_vm10 = vcmask 16384  }
  0x2f   :  { %368 = vmatpush.msra.mxu2 %v841_v34  ;;  %410 = vmatpush.msra.mxu3 %v822_v23  ;;  %v326_v11 = vand.u32 4294901760, %v325_v8 }
  0x30   :  { %285 = vmatpush.msra.mxu1 %v284_v15  ;;  %218 = vmatpush.msra.mxu0 %v843_v35  ;;  %v320_v10 = vand.u32 4294901760, %v319_v5 }
  0x31   :  { %371 = vmatpush.msra.mxu2 %v858_v56  ;;  %412 = vmatpush.msra.mxu3 %v824_v24 }
  0x32   :  { %291 = vmatpush.msra.mxu1 %v290_v20  ;;  %220 = vmatpush.msra.mxu0 %v869_v1 }
  0x33   :  { %374 = vmatpush.msra.mxu2 %v873_v3  ;;  %414 = vmatpush.msra.mxu3 %v843_v35 }
  0x34   :  { %297 = vmatpush.msra.mxu1 %v296_v36  ;;  %222 = vmatpush.msra.mxu0 %v882_v7 }
  0x35   :  { %158 = vrot.lane.b32.xlu0 %v157_v44, %s593_s21  ;;  %377 = vmatpush.msra.mxu2 %v897_v16 }
  0x36   :  { %303 = vmatpush.msra.mxu1 %v302_v57  ;;  %429 = vmatpush.msrb.mxu0 %v234_v47 }
  0x37   :  { %380 = vmatpush.msra.mxu2 %v905_v26  ;;  %416 = vmatpush.msra.mxu3 %v869_v1 }
  0x38   :  { %309 = vmatpush.msra.mxu1 %v308_v0  ;;  %433 = vmatpush.msrb.mxu0 %v240_v48  ;;  %v563_v48 = vld [vmem:[%s994_s2] ss:$0 sm:$0xff]  ;;  %s595_s2 = smov 16  }
  0x39   :  { %418 = vmatpush.msra.mxu3 %v882_v7 }
  0x3a   :  { %315 = vmatpush.msra.mxu1 %v314_v6  ;;  %437 = vmatpush.msrb.mxu0 %v246_v49 }
  0x3c   :  { %321 = vmatpush.msra.mxu1 %v320_v10  ;;  %441 = vmatpush.msrb.mxu0 %v252_v59 }
  0x3e   :  { %327 = vmatpush.msra.mxu1 %v326_v11  ;;  %445 = vmatpush.msrb.mxu0 %v258_v61 }
  0x40   :  { %496 = vmatpush.msrb.mxu1 %v695_v28  ;;  %449 = vmatpush.msrb.mxu0 %v264_v62  ;;  %v147_v28 = vsel %vm121_vm2, %v876_v4, %v854_v51 }
  0x41   :  { %150 = vst.msk [vmem:[#allocation3] sm:$0x3] %vm149_vm6, %v147_v28 }
  0x42   :  { %498 = vmatpush.msrb.mxu1 %v697_v29  ;;  %453 = vmatpush.msrb.mxu0 %v270_v12 }
  0x44   :  { %500 = vmatpush.msrb.mxu1 %v699_v30  ;;  %457 = vmatpush.msrb.mxu0 %v276_v27 }
  0x46   :  { %502 = vmatpush.msrb.mxu1 %v720_v41  ;;  %461 = vmatpush.msrb.mxu0 %v282_v31 }
  0x48   :  { %504 = vmatpush.msrb.mxu1 %v729_v45  ;;  %465 = vmatpush.msrb.mxu0 %v288_v43 }
  0x4a   :  { %506 = vmatpush.msrb.mxu1 %v731_v46  ;;  %469 = vmatpush.msrb.mxu0 %v294_v52 }
  0x4c   :  { %508 = vmatpush.msrb.mxu1 %v747_v55  ;;  %473 = vmatpush.msrb.mxu0 %v300_v2 }
  0x4e   :  { %510 = vmatpush.msrb.mxu1 %v798_v13  ;;  %477 = vmatpush.msrb.mxu0 %v306_v9 }
  0x50   :  { %512 = vmatpush.msrb.mxu1 %v801_v14  ;;  %481 = vmatpush.msrb.mxu0 %v312_v25 }
  0x52   :  { %514 = vmatpush.msrb.mxu1 %v815_v19  ;;  %485 = vmatpush.msrb.mxu0 %v318_v42 }
  0x54   :  { %516 = vmatpush.msrb.mxu1 %v820_v22  ;;  %489 = vmatpush.msrb.mxu0 %v324_v60 }
  0x56   :  { %518 = vmatpush.msrb.mxu1 %v822_v23 }
  0x58   :  { %520 = vmatpush.msrb.mxu1 %v824_v24 }
  0x5a   :  { %522 = vmatpush.msrb.mxu1 %v843_v35 }
  0x5c   :  { %524 = vmatpush.msrb.mxu1 %v869_v1 }
  0x5e   :  { %526 = vmatpush.msrb.mxu1 %v882_v7 }
  0x9f   :  { %v153_v29 = vpop.permute.xlu0 %152  ;;  %v166_v30 = vpop.permute.xlu1 %165 }
  0xa0   :  { %156 = vst.msk [vmem:[#allocation3 - $0x1] sm:$0x6] %vm155_vm7, %v153_v29 }
  0xa7   :  { %v159_v38 = vpop.permute.xlu0 %158 }
  0xa8   :  { %162 = vst.msk [vmem:[#allocation3 - $0x2] sm:$0xc] %vm161_vm8, %v159_v38 }
  0xa9   :  { %169 = vst.msk [vmem:[#allocation3 - $0x3] sm:$0x18] %vm168_vm9, %v166_v30 }
  0xb0   :  { %v170_v39 = vld [vmem:[#allocation3] sm:$0x3] }
  0xb1   :  { %v223_v40 = vand.u32 4294901760, %v170_v39 }
  0xb3   :  { %329 = vmatmul.f32.vlgmr.msra.gmra.mxu1 %v223_v40  ;;  %v224_v41 = vsub.f32 %v170_v39, %v223_v40 }
  0xb5   :  { %383 = vmatmul.f32.vlgmr.msra.gmra.mxu2 %v224_v41  ;;  %v225_v45 = vand.u32 4294901760, %v224_v41 }
  0xb7   :  { %422 = vmatmul.f32.vlgmr.msra.gmra.mxu3 %v225_v45  ;;  %v226_v46 = vsub.f32 %v224_v41, %v225_v45 }
  0xb9   :  { %v227_v47 = vand.u32 4294901760, %v226_v46 }
  0xbb   :  { %228 = vmatmul.f32.vlgmr.msra.gmra.mxu0 %v227_v47  ;;  %528 = vmatmul.f32.vlgmr.msrb.gmra.mxu1 %v223_v40 }
  0xc3   :  { %491 = vmatmul.f32.vlgmr.msrb.gmra.mxu0 %v223_v40 }
 0x130   :  { %v330_v49 = vpop.f32.mrf.mxu1 }
 0x138   :  { %v229_v50 = vpop.f32.mrf.mxu0  ;;  %v384_v55 = vpop.f32.mrf.mxu2 }
 0x139   :  { %v230_v53 = vadd.f32 %v563_v48, %v229_v50  ;;  %v529_v13 = vpop.f32.mrf.mxu1 }
 0x13a   :  { %v423_v61 = vpop.f32.mrf.mxu3 }
 0x13b   :  { %v331_v54 = vadd.f32 %v330_v49, %v230_v53 }
 0x13d   :  { %v385_v59 = vadd.f32 %v384_v55, %v331_v54 }
 0x13f   :  { %v424_v62 = vadd.f32 %v423_v61, %v385_v59 }
 0x140   :  { %v492_v63 = vpop.f32.mrf.mxu0 }
 0x141   :  { %v493_v12 = vadd.f32 %v492_v63, %v424_v62 }
 0x143   :  { %v530_v14 = vadd.f32 %v529_v13, %v493_v12 }
 0x145   :  { %v533_v17 = vrot.slane %v530_v14, 1  ;;  %536 = vst.msk [vmem:[#allocation4] sm:$0x1] %vm535_vm10, %v530_v14 }
 0x147   :  { %537 = vst.msk [vmem:[#allocation4 + $0x1] sm:$0x1] %vm535_vm10, %v533_v17 }
 0x148   :  { %550 = dma.vmem_to_hbm [thread:$0]  %s543_s25, 32, %s545_s28, [#allocation5], %s595_s2, %s595_s2, %s596_s29  }
 0x149   :  { %588 = dma.done.wait [#allocation5], 32  }
 0x14a   :  { %589 = vsyncadd [#allocation5], 4294967264 }
 0x14b   :  { %555 = vsyncpa [#allocation5], 1 }

</bundles_post_ra>
